<compile_context>
chip_gen: v6e
topology: v6e:2x2x1
jax: 0.10.0
libtpu: 0.0.40
codegen_flags: <defaults>
</compile_context>

<pallas_src>
import functools

import jax
import jax.numpy as jnp
from jax.experimental import pallas as pl
from jax.experimental.pallas import tpu as pltpu

NUM_CLASSES = 10
IN_FEATURES = 784  # 1 * 28 * 28


def _round_up(n, m):
    return ((n + m - 1) // m) * m


def smallnet_kernel(x_ref, w1_ref, b1_ref, w2_ref, b2_ref, o_ref, *, num_classes):
    # fc1: (TB, 784)bf16 @ (784, H_pad)bf16 -> f32 accum, + bias (f32), ReLU.
    h = jnp.dot(x_ref[...], w1_ref[...], preferred_element_type=jnp.float32)
    h = jnp.maximum(h + b1_ref[...], 0.0)

    # fc2: (TB, H_pad)bf16 @ (H_pad, N_pad)bf16 -> f32 accum, + bias (f32).
    logits = jnp.dot(h.astype(jnp.bfloat16), w2_ref[...],
                     preferred_element_type=jnp.float32)
    logits = logits + b2_ref[...]

    # Mask the padded (fake) classes so the softmax only covers the real ones.
    col = jax.lax.broadcasted_iota(jnp.int32, logits.shape, 1)
    logits = jnp.where(col < num_classes, logits, jnp.float32(-1e30))

    # Numerically stable softmax over the class axis; reciprocal on the EUP.
    m = jnp.max(logits, axis=-1, keepdims=True)
    e = jnp.exp(logits - m)
    denom = jnp.sum(e, axis=-1, keepdims=True)
    o_ref[...] = (e * pl.reciprocal(denom, approx=False)).astype(o_ref.dtype)


def smallnet_forward(x, w1, b1, w2, b2):
    """x: (B, 1, 28, 28) or (B, 784). w1: (784, H), b1: (H,), w2: (H, 10), b2: (10,).

    Weights are passed pre-transposed to (in, out) layout so the kernel does
    plain row-major matmuls on the MXU. Returns (B, 10) float32 softmax probs.
    """
    B = x.shape[0]
    x2d = x.reshape(B, -1)
    assert x2d.shape[1] == w1.shape[0] == IN_FEATURES
    H = w1.shape[1]
    assert w2.shape == (H, NUM_CLASSES)

    # --- padding for lane-dense tiles -------------------------------------
    H_pad = _round_up(H, 128)
    N_pad = _round_up(NUM_CLASSES, 128)

    # Batch tile: 256 rows keeps the 256x256 MXU full on v6e/v7x; for tiny
    # batches pad to a multiple of 16 (bf16 packs 16 rows per vreg).
    TB = 256 if B >= 256 else _round_up(B, 16)
    B_pad = _round_up(B, TB)

    x_p = jnp.pad(x2d.astype(jnp.float32), ((0, B_pad - B), (0, 0))).astype(jnp.bfloat16)
    w1_p = jnp.pad(w1.astype(jnp.float32), ((0, 0), (0, H_pad - H))).astype(jnp.bfloat16)
    b1_p = jnp.pad(b1.astype(jnp.float32), (0, H_pad - H)).reshape(1, H_pad)
    w2_p = jnp.pad(w2.astype(jnp.float32),
                   ((0, H_pad - H), (0, N_pad - NUM_CLASSES))).astype(jnp.bfloat16)
    b2_p = jnp.pad(b2.astype(jnp.float32), (0, N_pad - NUM_CLASSES)).reshape(1, N_pad)

    grid = (B_pad // TB,)

    cost = pl.CostEstimate(
        flops=2 * B_pad * (IN_FEATURES * H_pad + H_pad * N_pad),
        transcendentals=B_pad * N_pad,
        bytes_accessed=(x_p.size * 2 + w1_p.size * 2 + w2_p.size * 2
                        + b1_p.size * 4 + b2_p.size * 4 + B_pad * N_pad * 4),
    )

    out = pl.pallas_call(
        functools.partial(smallnet_kernel, num_classes=NUM_CLASSES),
        out_shape=jax.ShapeDtypeStruct((B_pad, N_pad), jnp.float32),
        grid_spec=pltpu.PrefetchScalarGridSpec(
            num_scalar_prefetch=0,
            grid=grid,
            in_specs=[
                pl.BlockSpec((TB, IN_FEATURES), lambda i: (i, 0)),   # x: batch-tiled
                pl.BlockSpec((IN_FEATURES, H_pad), lambda i: (0, 0)),  # w1: resident
                pl.BlockSpec((1, H_pad), lambda i: (0, 0)),            # b1: resident
                pl.BlockSpec((H_pad, N_pad), lambda i: (0, 0)),        # w2: resident
                pl.BlockSpec((1, N_pad), lambda i: (0, 0)),            # b2: resident
            ],
            out_specs=pl.BlockSpec((TB, N_pad), lambda i: (i, 0)),
        ),
        compiler_params=pltpu.CompilerParams(
            dimension_semantics=("parallel",),   # shard batch tiles across TCs (v7x)
        ),
        cost_estimate=cost,
    )(x_p, w1_p, b1_p, w2_p, b2_p)

    # Strip batch and class padding.
    return out[:B, :NUM_CLASSES]


if __name__ == "__main__":
    key = jax.random.PRNGKey(0)
    k_x, k_w1, k_b1, k_w2, k_b2 = jax.random.split(key, 5)

    B = 2          # batch
    HIDDEN = 32    # small hidden size (module default is 256)

    # Deterministic synthetic parameters (PyTorch stores Linear weight as (out, in);
    # we generate (out, in) and transpose to (in, out) for the kernel).
    x = jax.random.normal(k_x, (B, 1, 28, 28), dtype=jnp.float32)
    w1_t = jax.random.normal(k_w1, (HIDDEN, IN_FEATURES), dtype=jnp.float32) * 0.05  # fc1.weight
    b1 = jax.random.normal(k_b1, (HIDDEN,), dtype=jnp.float32) * 0.05                # fc1.bias
    w2_t = jax.random.normal(k_w2, (10, HIDDEN), dtype=jnp.float32) * 0.05           # fc2.weight
    b2 = jax.random.normal(k_b2, (10,), dtype=jnp.float32) * 0.05                    # fc2.bias

    out = smallnet_forward(x, w1_t.T, b1, w2_t.T, b2)
    out = jax.block_until_ready(out)
    assert out.shape == (B, 10)

    # Reference with matching precision (bf16 operands, f32 accumulation).
    x2d = x.reshape(B, -1)
    x_bf = x2d.astype(jnp.bfloat16)
    w1_bf = w1_t.T.astype(jnp.bfloat16)
    w2_bf = w2_t.T.astype(jnp.bfloat16)
    h_ref = jnp.maximum(
        jnp.dot(x_bf, w1_bf, preferred_element_type=jnp.float32) + b1, 0.0)
    logits_ref = jnp.dot(h_ref.astype(jnp.bfloat16), w2_bf,
                         preferred_element_type=jnp.float32) + b2
    ref = jax.nn.softmax(logits_ref, axis=1)

    assert jnp.allclose(out, ref, atol=1e-4, rtol=1e-4)
    assert jnp.allclose(jnp.sum(out, axis=1), 1.0, atol=1e-5)

    print("KERNEL_OK")
</pallas_src>

<mosaic_0001>
module attributes {stable_mosaic.version = 11 : i64} {
  func.func @smallnet_kernel(%arg0: i32, %arg1: memref<16x784xbf16, #tpu.memory_space<vmem>>, %arg2: memref<784x128xbf16, #tpu.memory_space<vmem>>, %arg3: memref<1x128xf32, #tpu.memory_space<vmem>>, %arg4: memref<128x128xbf16, #tpu.memory_space<vmem>>, %arg5: memref<1x128xf32, #tpu.memory_space<vmem>>, %arg6: memref<16x128xf32, #tpu.memory_space<vmem>>) attributes {dimension_semantics = [#tpu.dimension_semantics<parallel>], iteration_bounds = array<i64: 1>, scalar_prefetch = 0 : i64, scratch_operands = 0 : i64, tpu.core_type = #tpu.core_type<tc>, window_params = [{transform_indices = @transform_0, window_bounds = array<i64: 16, 784>}, {pipeline_mode = #tpu.pipeline_mode<synchronous>, transform_indices = @transform_1, window_bounds = array<i64: 784, 128>}, {pipeline_mode = #tpu.pipeline_mode<synchronous>, transform_indices = @transform_2, window_bounds = array<i64: 1, 128>}, {pipeline_mode = #tpu.pipeline_mode<synchronous>, transform_indices = @transform_3, window_bounds = array<i64: 128, 128>}, {pipeline_mode = #tpu.pipeline_mode<synchronous>, transform_indices = @transform_4, window_bounds = array<i64: 1, 128>}, {transform_indices = @transform_5, window_bounds = array<i64: 16, 128>}]} {
    %c0 = arith.constant 0 : index
    %c0_0 = arith.constant 0 : index
    %0 = vector.load %arg1[%c0, %c0_0] : memref<16x784xbf16, #tpu.memory_space<vmem>>, vector<16x784xbf16>
    %c0_1 = arith.constant 0 : index
    %c0_2 = arith.constant 0 : index
    %1 = vector.load %arg2[%c0_1, %c0_2] : memref<784x128xbf16, #tpu.memory_space<vmem>>, vector<784x128xbf16>
    %cst = arith.constant dense<0.000000e+00> : vector<16x128xf32>
    %2 = tpu.matmul %0, %1, %cst {dimension_numbers = #tpu.dot_dimension_numbers<[1], [0], [0], [1], [0, 0, 1, 1], [], []>} : vector<16x784xbf16>, vector<784x128xbf16>, vector<16x128xf32> -> vector<16x128xf32>
    %c0_3 = arith.constant 0 : index
    %c0_4 = arith.constant 0 : index
    %3 = vector.load %arg3[%c0_3, %c0_4] : memref<1x128xf32, #tpu.memory_space<vmem>>, vector<1x128xf32>
    %4 = vector.broadcast %3 : vector<1x128xf32> to vector<16x128xf32>
    %5 = arith.addf %2, %4 : vector<16x128xf32>
    %cst_5 = arith.constant 0.000000e+00 : f32
    %6 = vector.broadcast %cst_5 : f32 to vector<16x128xf32>
    %7 = arith.maximumf %5, %6 : vector<16x128xf32>
    %8 = arith.truncf %7 : vector<16x128xf32> to vector<16x128xbf16>
    %c0_6 = arith.constant 0 : index
    %c0_7 = arith.constant 0 : index
    %9 = vector.load %arg4[%c0_6, %c0_7] : memref<128x128xbf16, #tpu.memory_space<vmem>>, vector<128x128xbf16>
    %cst_8 = arith.constant dense<0.000000e+00> : vector<16x128xf32>
    %10 = tpu.matmul %8, %9, %cst_8 {dimension_numbers = #tpu.dot_dimension_numbers<[1], [0], [0], [1], [0, 0, 1, 1], [], []>} : vector<16x128xbf16>, vector<128x128xbf16>, vector<16x128xf32> -> vector<16x128xf32>
    %c0_9 = arith.constant 0 : index
    %c0_10 = arith.constant 0 : index
    %11 = vector.load %arg5[%c0_9, %c0_10] : memref<1x128xf32, #tpu.memory_space<vmem>>, vector<1x128xf32>
    %12 = vector.broadcast %11 : vector<1x128xf32> to vector<16x128xf32>
    %13 = arith.addf %10, %12 : vector<16x128xf32>
    %14 = tpu.iota {dimensions = array<i32: 1>} : vector<16x128xi32>
    %c10_i32 = arith.constant 10 : i32
    %15 = vector.broadcast %c10_i32 : i32 to vector<16x128xi32>
    %16 = arith.cmpi slt, %14, %15 : vector<16x128xi32>
    %cst_11 = arith.constant -1.000000e+30 : f32
    %17 = vector.broadcast %cst_11 : f32 to vector<16x128xf32>
    %18 = arith.select %16, %13, %17 : vector<16x128xi1>, vector<16x128xf32>
    %cst_12 = arith.constant dense<0xFF800000> : vector<16xf32>
    %19 = vector.multi_reduction <maximumf>, %18, %cst_12 [1] : vector<16x128xf32> to vector<16xf32>
    %20 = vector.shape_cast %19 : vector<16xf32> to vector<16x1xf32>
    %21 = vector.broadcast %20 : vector<16x1xf32> to vector<16x128xf32>
    %22 = arith.subf %18, %21 : vector<16x128xf32>
    %23 = math.exp %22 : vector<16x128xf32>
    %cst_13 = arith.constant dense<0.000000e+00> : vector<16xf32>
    %24 = vector.multi_reduction <add>, %23, %cst_13 [1] : vector<16x128xf32> to vector<16xf32>
    %25 = vector.shape_cast %24 : vector<16xf32> to vector<16x1xf32>
    %26 = tpu.reciprocal %25 : vector<16x1xf32> -> vector<16x1xf32>
    %27 = vector.broadcast %26 : vector<16x1xf32> to vector<16x128xf32>
    %28 = arith.mulf %23, %27 : vector<16x128xf32>
    %c0_14 = arith.constant 0 : index
    %c0_15 = arith.constant 0 : index
    %29 = vector.load %arg6[%c0_14, %c0_15] : memref<16x128xf32, #tpu.memory_space<vmem>>, vector<16x128xf32>
    tpu.vector_store %arg6[%c0_14, %c0_15], %28 {strides = array<i32>} : memref<16x128xf32, #tpu.memory_space<vmem>>, vector<16x128xf32>,
    return
  }
  func.func @transform_0(%arg0: i32) -> (i32, i32) {
    %c0_i32 = arith.constant 0 : i32
    %c0_i32_0 = arith.constant 0 : i32
    return %arg0, %c0_i32 : i32, i32
  }
  func.func @transform_1(%arg0: i32) -> (i32, i32) {
    %c0_i32 = arith.constant 0 : i32
    %c0_i32_0 = arith.constant 0 : i32
    %c0_i32_1 = arith.constant 0 : i32
    return %c0_i32, %c0_i32_0 : i32, i32
  }
  func.func @transform_2(%arg0: i32) -> (i32, i32) {
    %c0_i32 = arith.constant 0 : i32
    %c0_i32_0 = arith.constant 0 : i32
    %c0_i32_1 = arith.constant 0 : i32
    return %c0_i32, %c0_i32_0 : i32, i32
  }
  func.func @transform_3(%arg0: i32) -> (i32, i32) {
    %c0_i32 = arith.constant 0 : i32
    %c0_i32_0 = arith.constant 0 : i32
    %c0_i32_1 = arith.constant 0 : i32
    return %c0_i32, %c0_i32_0 : i32, i32
  }
  func.func @transform_4(%arg0: i32) -> (i32, i32) {
    %c0_i32 = arith.constant 0 : i32
    %c0_i32_0 = arith.constant 0 : i32
    %c0_i32_1 = arith.constant 0 : i32
    return %c0_i32, %c0_i32_0 : i32, i32
  }
  func.func @transform_5(%arg0: i32) -> (i32, i32) {
    %c0_i32 = arith.constant 0 : i32
    %c0_i32_0 = arith.constant 0 : i32
    return %arg0, %c0_i32 : i32, i32
  }
}

</mosaic_0001>

<bundles_post_ra>
// kernel: tpu_custom_call.1
= control target key start
LH: loop header
LB: loop body
LE: loop exit
PB: predicated region body
PF: predicated region fallthrough
CT: control target
= control target key end

     0   :  { %10 = vsyncpa [#allocation3], 0  ;;  %s1247_s0 = inlined_call_operand.hbm [shape: bf16[16,784], index: 0, kind: input, shape index: {}]   ;;  %s1248_s1 = inlined_call_operand.hbm [shape: bf16[784,128], index: 1, kind: input, shape index: {}]   ;;  %s1249_s2 = inlined_call_operand.vmem [shape: f32[1,128], index: 2, kind: input, shape index: {}]   ;;  %s1250_s3 = inlined_call_operand.hbm [shape: bf16[128,128], index: 3, kind: input, shape index: {}]   ;;  %s1251_s4 = inlined_call_operand.vmem [shape: f32[1,128], index: 4, kind: input, shape index: {}]   ;;  %s1252_s5 = inlined_call_operand.hbm [shape: f32[16,128], index: 5, kind: output, shape index: {}]  }
   0x1   :  { %11 = vsyncpa [#allocation6], 0 }
   0x2   :  { %12 = vsyncpa [#allocation4], 0  ;;  %s1174_s18 = smov [#allocation5]  }
   0x3   :  { %s30_s19 = sshll.u32 %s1174_s18, 4  ;;  %s31_s19 = int_to_ptr.vmem [resolvable:$true] %s30_s19 }
   0x4   :  { %s1096_s20 = scalar_lea.vmem %s31_s19, 6272  ;;  %p1101_p1 = scmp.lt.s32.totalorder %s31_s19, %s31_s19 }
   0x5   :  { %p1097_p0 = scmp.ne.s32.totalorder %s31_s19, %s1096_s20  ;;  %p1102_p2 = scmp.lt.s32.totalorder %s1096_s20, %s1096_s20 }
   0x7   :  { %p1103_p3 = por %p1102_p2, %p1101_p1 }
   0x9   :  { %p1104_p4 = pnand %p1103_p3, %p1097_p0 }
   0xb   :  { %1107 = shalt.err (!%p1104_p4)
}
   0xc   :  { %s1175_s21 = smov 64   ;;  %s1176_s22 = smov 4  }
   0xd   :  { %36 = dma.hbm_to_vmem [thread:$0]  %s1248_s1, 6272, %s31_s19, [#allocation6], %s1175_s21, %s1175_s21, %s1176_s22  }
   0xe   :  { %s1177_s25 = smov [#allocation2]  }
   0xf   :  { %s18_s26 = sshll.u32 %s1177_s25, 4  ;;  %s19_s26 = int_to_ptr.vmem [resolvable:$true] %s18_s26 }
  0x10   :  { %s1116_s27 = scalar_lea.vmem %s19_s26, 896  ;;  %p1121_p6 = scmp.lt.s32.totalorder %s19_s26, %s19_s26 }
  0x11   :  { %p1117_p5 = scmp.ne.s32.totalorder %s19_s26, %s1116_s27  ;;  %p1122_p7 = scmp.lt.s32.totalorder %s1116_s27, %s1116_s27 }
  0x13   :  { %p1123_p8 = por %p1122_p7, %p1121_p6 }
  0x15   :  { %p1124_p9 = pnand %p1123_p8, %p1117_p5 }
  0x17   :  { %1127 = shalt.err (!%p1124_p9)
}
  0x18   :  { %s1178_s28 = smov 448   ;;  %s1179_s29 = smov 28  }
  0x19   :  { %24 = dma.hbm_to_vmem [thread:$0]  %s1247_s0, 896, %s19_s26, [#allocation3], %s1178_s28, %s1178_s28, %s1179_s29  }
  0x1a   :  { %s1180_s7 = smov [#allocation7]  }
  0x1b   :  { %s44_s8 = sshll.u32 %s1180_s7, 4  ;;  %s45_s8 = int_to_ptr.vmem [resolvable:$true] %s44_s8 }
  0x1c   :  { %s1136_s1 = scalar_lea.vmem %s45_s8, 1024  ;;  %p1141_p11 = scmp.lt.s32.totalorder %s45_s8, %s45_s8 }
  0x1d   :  { %p1137_p10 = scmp.ne.s32.totalorder %s45_s8, %s1136_s1  ;;  %p1142_p12 = scmp.lt.s32.totalorder %s1136_s1, %s1136_s1 }
  0x1f   :  { %p1143_p13 = por %p1142_p12, %p1141_p11 }
  0x21   :  { %p1144_p0 = pnand %p1143_p13, %p1137_p10 }
  0x23   :  { %1147 = shalt.err (!%p1144_p0)
}
  0x24   :  { %50 = dma.hbm_to_vmem [thread:$0]  %s1250_s3, 1024, %s45_s8, [#allocation6], %s1175_s21, %s1175_s21, %s1176_s22  }
  0x25   :  { %1168 = dma.done.wait [#allocation3], 896  }
  0x26   :  { %1169 = vsyncadd [#allocation3], 4294966400 }
  0x27   :  { %1170 = dma.done.wait [#allocation6], 7296  }
  0x28   :  { %1171 = vsyncadd [#allocation6], 4294960000  ;;  %v1013_v0 = vld [vmem:[#allocation5 + $0x78] sm:$0xff]   ;;  %v1017_v4 = vld [vmem:[#allocation5 + $0x70] sm:$0xff]   ;;  %v1181_v38 = vmov 0.0   ;;  %vm1182_vm0 = vmmov 0  }
  0x29   :  { %v1014_v1 = vld [vmem:[#allocation5 + $0x38] sm:$0xff]   ;;  %898 = vmatprep.subr.bf16.mxu0 %v1013_v0  ;;  %v1018_v5 = vld [vmem:[#allocation5 + $0x30] sm:$0xff]   ;;  %v1021_v8 = vld [vmem:[#allocation5 + $0x68] sm:$0xff]   ;;  %vm505_vm1 = vcmask 130048  }
  0x2a   :  { %v1015_v2 = vld [vmem:[#allocation5 + $0xf8] sm:$0xff]   ;;  %899 = vmatpush3.bf16.msra.mxu0 %v1014_v1  ;;  %v1019_v6 = vld [vmem:[#allocation5 + $0xf0] sm:$0xff]   ;;  %v1022_v9 = vld [vmem:[#allocation5 + $0x28] sm:$0xff]  }
  0x2b   :  { %v1016_v3 = vld [vmem:[#allocation5 + $0xb8] sm:$0xff]   ;;  %920 = vmatprep.subr.bf16.mxu1 %v1015_v2  ;;  %900 = vmatprep.subr.bf16.mxu0 %v1017_v4  ;;  %v1020_v7 = vld [vmem:[#allocation5 + $0xb0] sm:$0xff]   ;;  %v1023_v10 = vld [vmem:[#allocation5 + $0xe8] sm:$0xff]  }
  0x2c   :  { %921 = vmatpush3.bf16.msra.mxu1 %v1016_v3  ;;  %v1024_v11 = vld [vmem:[#allocation5 + $0xa8] sm:$0xff]   ;;  %v1025_v12 = vld [vmem:[#allocation5 + $0x60] sm:$0xff]   ;;  %v1029_v16 = vld [vmem:[#allocation5 + $0x58] sm:$0xff]  }
  0x2d   :  { %922 = vmatprep.subr.bf16.mxu1 %v1019_v6  ;;  %v1026_v13 = vld [vmem:[#allocation5 + $0x20] sm:$0xff]   ;;  %v1030_v17 = vld [vmem:[#allocation5 + $0x18] sm:$0xff]   ;;  %v1033_v20 = vld [vmem:[#allocation5 + $0x50] sm:$0xff]  }
  0x2e   :  { %901 = vmatpush3.bf16.msra.mxu0 %v1018_v5  ;;  %v1027_v14 = vld [vmem:[#allocation5 + $0xe0] sm:$0xff]   ;;  %v1031_v18 = vld [vmem:[#allocation5 + $0xd8] sm:$0xff]   ;;  %v1034_v21 = vld [vmem:[#allocation5 + $0x10] sm:$0xff]  }
  0x2f   :  { %902 = vmatprep.subr.bf16.mxu0 %v1021_v8  ;;  %v1028_v15 = vld [vmem:[#allocation5 + $0xa0] sm:$0xff]   ;;  %v1032_v19 = vld [vmem:[#allocation5 + $0x98] sm:$0xff]   ;;  %v1035_v22 = vld [vmem:[#allocation5 + $0xd0] sm:$0xff]  }
  0x30   :  { %923 = vmatpush3.bf16.msra.mxu1 %v1020_v7  ;;  %v1036_v23 = vld [vmem:[#allocation5 + $0x90] sm:$0xff]   ;;  %v1037_v24 = vld [vmem:[#allocation5 + $0x48] sm:$0xff]   ;;  %v1041_v28 = vld [vmem:[#allocation5 + $0x40] sm:$0xff]  }
  0x31   :  { %924 = vmatprep.subr.bf16.mxu1 %v1023_v10  ;;  %v1038_v25 = vld [vmem:[#allocation5 + $0x8] sm:$0xff]   ;;  %v1042_v29 = vld [vmem:[#allocation5] sm:$0xff]   ;;  %v1048_v34 = vld [vmem:[#allocation5 + $0x178] sm:$0xff]  }
  0x32   :  { %903 = vmatpush3.bf16.msra.mxu0 %v1022_v9  ;;  %v1039_v26 = vld [vmem:[#allocation5 + $0xc8] sm:$0xff]   ;;  %v1043_v30 = vld [vmem:[#allocation5 + $0xc0] sm:$0xff]   ;;  %v1051_v36 = vld [vmem:[#allocation2 + $0xc] ss:$28 sps:$4 sm:$0xff]  }
  0x33   :  { %904 = vmatprep.subr.bf16.mxu0 %v1025_v12  ;;  %v1040_v27 = vld [vmem:[#allocation5 + $0x88] sm:$0xff]   ;;  %v1047_v33 = vld [vmem:[#allocation5 + $0x80] sm:$0xff]   ;;  %v1052_v37 = vld [vmem:[#allocation5 + $0x138] sm:$0xff]   ;;  %582 = vmatprep.mubr.bf16.mxu1 %v1051_v36 }
  0x34   :  { %925 = vmatpush3.bf16.msra.mxu1 %v1024_v11  ;;  %v1044_v31 = vld [vmem:[#allocation2] ss:$28 sps:$4 sm:$0xff]   ;;  %v1049_v35 = vld [vmem:[#allocation2 + $0x8] ss:$28 sps:$4 sm:$0xff]   ;;  %v1059_v45 = vld [vmem:[#allocation5 + $0x158] sm:$0xff]  }
  0x35   :  { %926 = vmatprep.subr.bf16.mxu1 %v1027_v14  ;;  %v1046_v32 = vld [vmem:[#allocation2 + $0x4] ss:$28 sps:$4 sm:$0xff]   ;;  %v1053_v39 = vld [vmem:[#allocation5 + $0x170] sm:$0xff]   ;;  %v1057_v43 = vld [vmem:[#allocation5 + $0x160] sm:$0xff]  }
  0x36   :  { %905 = vmatpush3.bf16.msra.mxu0 %v1026_v13  ;;  %541 = vmatprep.mubr.bf16.mxu0 %v1046_v32  ;;  %v1054_v40 = vld [vmem:[#allocation5 + $0x130] sm:$0xff]   ;;  %v1055_v41 = vld [vmem:[#allocation5 + $0x168] sm:$0xff]   ;;  %v1058_v44 = vld [vmem:[#allocation5 + $0x120] sm:$0xff]  }
  0x37   :  { %906 = vmatprep.subr.bf16.mxu0 %v1029_v16  ;;  %v1056_v42 = vld [vmem:[#allocation5 + $0x128] sm:$0xff]   ;;  %v1060_v46 = vld [vmem:[#allocation5 + $0x118] sm:$0xff]   ;;  %v1061_v47 = vld [vmem:[#allocation5 + $0x150] sm:$0xff]  }
  0x38   :  { %927 = vmatpush3.bf16.msra.mxu1 %v1028_v15  ;;  %v1067_v48 = vld [vmem:[#allocation5 + $0x180] sm:$0xff]   ;;  %v1062_v49 = vld [vmem:[#allocation5 + $0x110] sm:$0xff]   ;;  %v1070_v50 = vld [vmem:[#allocation2 + $0x14] ss:$28 sps:$4 sm:$0xff]  }
  0x39   :  { %928 = vmatprep.subr.bf16.mxu1 %v1031_v18  ;;  %v1063_v51 = vld [vmem:[#allocation5 + $0x148] sm:$0xff]   ;;  %v1071_v52 = vld [vmem:[#allocation2 + $0x18] ss:$28 sps:$4 sm:$0xff]   ;;  %v1068_v56 = vld [vmem:[#allocation2 + $0x10] ss:$28 sps:$4 sm:$0xff]  }
  0x3a   :  { %907 = vmatpush3.bf16.msra.mxu0 %v1030_v17  ;;  %v1064_v53 = vld [vmem:[#allocation5 + $0x108] sm:$0xff]   ;;  %v1065_v54 = vld [vmem:[#allocation5 + $0x140] sm:$0xff]   ;;  %v1073_v58 = vld [vmem:[#allocation7 + $0x30] sm:$0xff]  }
  0x3b   :  { %908 = vmatprep.subr.bf16.mxu0 %v1033_v20  ;;  %v1066_v55 = vld [vmem:[#allocation5 + $0x100] sm:$0xff]   ;;  %v1074_v59 = vld [vmem:[#allocation7 + $0x28] sm:$0xff]   ;;  %v1075_v60 = vld [vmem:[#allocation7 + $0x20] sm:$0xff]  }
  0x3c   :  { %929 = vmatpush3.bf16.msra.mxu1 %v1032_v19  ;;  %v1072_v57 = vld [vmem:[#allocation7 + $0x38] sm:$0xff]   ;;  %v1077_v62 = vld [vmem:[#allocation7 + $0x10] sm:$0xff]   ;;  %v1078_v63 = vld [vmem:[#allocation7 + $0x8] sm:$0xff]  }
  0x3d   :  { %930 = vmatprep.subr.bf16.mxu1 %v1035_v22  ;;  %v1076_v61 = vld [vmem:[#allocation7 + $0x18] sm:$0xff]   ;;  %v1079_v0 = vld [vmem:[#allocation7] sm:$0xff]  }
  0x3e   :  { %909 = vmatpush3.bf16.msra.mxu0 %v1034_v21  ;;  %v831_v13 = vld [vmem:[%s1249_s2] ss:$0 sm:$0xff] }
  0x3f   :  { %910 = vmatprep.subr.bf16.mxu0 %v1037_v24 }
  0x40   :  { %931 = vmatpush3.bf16.msra.mxu1 %v1036_v23 }
  0x41   :  { %932 = vmatprep.subr.bf16.mxu1 %v1039_v26 }
  0x42   :  { %911 = vmatpush3.bf16.msra.mxu0 %v1038_v25 }
  0x43   :  { %912 = vmatprep.subr.bf16.mxu0 %v1041_v28 }
  0x44   :  { %933 = vmatpush3.bf16.msra.mxu1 %v1040_v27 }
  0x45   :  { %934 = vmatprep.subr.bf16.mxu1 %v1043_v30 }
  0x46   :  { %913 = vmatpush3.bf16.msra.mxu0 %v1042_v29 }
  0x47   :  { %942 = vmatprep.subr.bf16.mxu0 %v1048_v34 }
  0x48   :  { %935 = vmatpush3.bf16.msra.mxu1 %v1047_v33 }
  0x49   :  { %542 = vmatmul.mubr.bf16.vlgmr.msra.gmra.mxu0 %v1044_v31  ;;  %975 = vmatprep.subr.bf16.mxu1 %v1181_v38 }
  0x4a   :  { %943 = vmatpush3.bf16.msra.mxu0 %v1052_v37  ;;  %623 = vmatprep.mubr.bf16.mxu0 %v1070_v50  ;;  %v889_v37 = vld [vmem:[%s1251_s4] ss:$0 sm:$0xff]  ;;  %s1183_s4 = smov [#allocation8]  }
  0x4b   :  { %583 = vmatmul.mubr.bf16.vlgmr.msra.gmra.mxu1 %v1049_v35  ;;  %944 = vmatprep.subr.bf16.mxu0 %v1053_v39  ;;  %v788_v35 = vlaneseq  ;;  %s818_s12 = sshll.u32 %s1183_s4, 4  ;;  %s819_s12 = int_to_ptr.vmem [resolvable:$true] %s818_s12 }
  0x4c   :  { %977 = vmatprep.mubr.msk.bf16.mxu1 %vm1182_vm0, %v1181_v38  ;;  %976 = vmatpush3.bf16.msra.mxu1 %v1067_v48  ;;  %s1148_s13 = scalar_lea.vmem %s819_s12, 256  ;;  %p1153_p2 = scmp.lt.s32.totalorder %s819_s12, %s819_s12 }
  0x4d   :  { %981 = vmatprep.subr.bf16.mxu1 %v1181_v38  ;;  %v789_v36 = vand.u32 127, %v788_v35  ;;  %p1149_p1 = scmp.ne.s32.totalorder %s819_s12, %s1148_s13  ;;  %p1154_p3 = scmp.lt.s32.totalorder %s1148_s13, %s1148_s13 }
  0x4e   :  { %945 = vmatpush3.bf16.msra.mxu0 %v1054_v40 }
  0x4f   :  { %946 = vmatprep.subr.bf16.mxu0 %v1055_v41  ;;  %vm790_vm2 = vcmp.lt.s32.totalorder %v789_v36, 10  ;;  %p1155_p4 = por %p1154_p3, %p1153_p2 }
  0x51   :  { %p1156_p5 = pnand %p1155_p4, %p1149_p1 }
  0x52   :  { %947 = vmatpush3.bf16.msra.mxu0 %v1056_v42 }
  0x53   :  { %948 = vmatprep.subr.bf16.mxu0 %v1057_v43  ;;  %978 = vmatmul.mubr.msk.bf16.vlgmr.msra.gmra.mxu1 %vm505_vm1, %v1071_v52 }
  0x54   :  { %997 = vmatprep.mubr.msk.bf16.mxu1 %vm1182_vm0, %v1181_v38  ;;  %982 = vmatpush3.bf16.msra.mxu1 %v1072_v57 }
  0x55   :  { %983 = vmatprep.subr.bf16.mxu1 %v1181_v38 }
  0x56   :  { %949 = vmatpush3.bf16.msra.mxu0 %v1058_v44 }
  0x57   :  { %950 = vmatprep.subr.bf16.mxu0 %v1059_v45 }
  0x58   :  { %984 = vmatpush3.bf16.msra.mxu1 %v1073_v58 }
  0x59   :  { %985 = vmatprep.subr.bf16.mxu1 %v1181_v38 }
  0x5a   :  { %951 = vmatpush3.bf16.msra.mxu0 %v1060_v46 }
  0x5b   :  { %952 = vmatprep.subr.bf16.mxu0 %v1061_v47 }
  0x5c   :  { %986 = vmatpush3.bf16.msra.mxu1 %v1074_v59 }
  0x5d   :  { %987 = vmatprep.subr.bf16.mxu1 %v1181_v38 }
  0x5e   :  { %953 = vmatpush3.bf16.msra.mxu0 %v1062_v49 }
  0x5f   :  { %954 = vmatprep.subr.bf16.mxu0 %v1063_v51 }
  0x60   :  { %988 = vmatpush3.bf16.msra.mxu1 %v1075_v60 }
  0x61   :  { %989 = vmatprep.subr.bf16.mxu1 %v1181_v38 }
  0x62   :  { %955 = vmatpush3.bf16.msra.mxu0 %v1064_v53 }
  0x63   :  { %956 = vmatprep.subr.bf16.mxu0 %v1065_v54 }
  0x64   :  { %990 = vmatpush3.bf16.msra.mxu1 %v1076_v61 }
  0x65   :  { %991 = vmatprep.subr.bf16.mxu1 %v1181_v38 }
  0x66   :  { %957 = vmatpush3.bf16.msra.mxu0 %v1066_v55 }
  0x68   :  { %992 = vmatpush3.bf16.msra.mxu1 %v1077_v62 }
  0x69   :  { %624 = vmatmul.mubr.bf16.vlgmr.msra.gmra.mxu0 %v1068_v56  ;;  %993 = vmatprep.subr.bf16.mxu1 %v1181_v38 }
  0x6c   :  { %994 = vmatpush3.bf16.msra.mxu1 %v1078_v63 }
  0x6d   :  { %995 = vmatprep.subr.bf16.mxu1 %v1181_v38 }
  0x70   :  { %996 = vmatpush3.bf16.msra.mxu1 %v1079_v0 }
 0x109   :  { %v914_v4 = vpop.f32.mrf.mxu0 }
 0x10b   :  { %v936_v1 = vpop.f32.mrf.mxu1  ;;  %v915_v7 = vpop.f32.mrf.mxu0 }
 0x10c   :  { %v916_v12 = vadd.f32 %v915_v7, %v914_v4 }
 0x10d   :  { %v937_v2 = vpop.f32.mrf.mxu1  ;;  %v917_v10 = vpop.f32.mrf.mxu0 }
 0x10e   :  { %v544_v15 = vadd.f32 %v916_v12, %v831_v13  ;;  %v938_v16 = vadd.f32 %v937_v2, %v936_v1 }
 0x10f   :  { %v939_v3 = vpop.f32.mrf.mxu1  ;;  %v918_v14 = vpop.f32.mrf.mxu0 }
 0x110   :  { %v919_v17 = vadd.f32 %v918_v14, %v917_v10  ;;  %v585_v20 = vadd.f32 %v938_v16, %v544_v15 }
 0x111   :  { %v940_v5 = vpop.f32.mrf.mxu1 }
 0x112   :  { %v547_v21 = vadd.f32 %v919_v17, %v831_v13  ;;  %v941_v22 = vadd.f32 %v940_v5, %v939_v3 }
 0x113   :  { %v666_v6 = vpop.f32.mrf.mxu1 }
 0x114   :  { %v588_v27 = vadd.f32 %v941_v22, %v547_v21 }
 0x115   :  { %v979_v8 = vpop.f32.mrf.mxu1 }
 0x117   :  { %v669_v9 = vpop.f32.mrf.mxu1 }
 0x119   :  { %v980_v11 = vpop.f32.mrf.mxu1 }
 0x129   :  { %v958_v18 = vpop.f32.mrf.mxu0 }
 0x12b   :  { %v959_v19 = vpop.f32.mrf.mxu0 }
 0x12c   :  { %v960_v23 = vadd.f32 %v959_v19, %v958_v18 }
 0x12d   :  { %v961_v24 = vpop.f32.mrf.mxu0 }
 0x12e   :  { %v626_v25 = vadd.f32 %v960_v23, %v585_v20 }
 0x12f   :  { %v962_v26 = vpop.f32.mrf.mxu0 }
 0x130   :  { %v963_v28 = vadd.f32 %v962_v26, %v961_v24  ;;  %v667_v29 = vadd.f32 %v666_v6, %v626_v25 }
 0x132   :  { %v629_v30 = vadd.f32 %v963_v28, %v588_v27  ;;  %v673_v32 = vmax.f32 %v667_v29, 0.0 }
 0x134   :  { %v670_v31 = vadd.f32 %v669_v9, %v629_v30 }
 0x136   :  { %v674_v33 = vmax.f32 %v670_v31, 0.0 }
 0x138   :  { %v675_v34 = vpack.c.bf16 %v674_v33, %v673_v32 }
 0x13a   :  { %998 = vmatmul.mubr.bf16.vlgmr.msra.gmra.mxu1 %v675_v34 }
 0x1fa   :  { %v781_v38 = vpop.f32.mrf.mxu1 }
 0x1fb   :  { %v782_v39 = vadd.f32 %v889_v37, %v781_v38 }
 0x1fc   :  { %v999_v40 = vpop.f32.mrf.mxu1 }
 0x1fd   :  { %v791_v41 = vsel %vm790_vm2, %v782_v39, -1e+30 }
 0x1fe   :  { %793 = vmax.xlane.f32.xlu0 %v791_v41  ;;  %v784_v42 = vpop.f32.mrf.mxu1 }
 0x1ff   :  { %v785_v43 = vadd.f32 %v889_v37, %v784_v42 }
 0x200   :  { %v1000_v44 = vpop.f32.mrf.mxu1 }
 0x201   :  { %v792_v45 = vsel %vm790_vm2, %v785_v43, -1e+30 }
 0x202   :  { %795 = vmax.xlane.f32.xlu0 %v792_v45 }
 0x287   :  { %v794_v46 = vpop.xlane.xlu0 %793 }
 0x288   :  { %v797_v47 = vsub.f32 %v791_v41, %v794_v46 }
 0x28a   :  { %v799_v48 = vmul.f32 1.442695, %v797_v47 }
 0x28b   :  { %v796_v49 = vpop.xlane.xlu0 %795 }
 0x28c   :  { %1080 = vpow2.f32 %v799_v48  ;;  %v798_v50 = vsub.f32 %v792_v45, %v796_v49 }
 0x28e   :  { %v801_v51 = vmul.f32 1.442695, %v798_v50 }
 0x290   :  { %1082 = vpow2.f32 %v801_v51 }
 0x299   :  { %v1081_v52 = vpop.eup %1080 }
 0x29a   :  { %803 = vadd.xlane.f32.xlu1 %v1081_v52 }
 0x29d   :  { %v1083_v53 = vpop.eup %1082 }
 0x29e   :  { %805 = vadd.xlane.f32.xlu1 %v1083_v53 }
 0x323   :  { %v804_v54 = vpop.xlane.xlu1 %803 }
 0x324   :  { %1084 = vrcp.f32 %v804_v54 }
 0x327   :  { %v806_v55 = vpop.xlane.xlu1 %805 }
 0x328   :  { %1086 = vrcp.f32 %v806_v55 }
 0x331   :  { %v1085_v56 = vpop.eup %1084 }
 0x332   :  { %v809_v57 = vmul.f32 %v1085_v56, %v1081_v52 }
 0x334   :  { %811 = vst [vmem:[#allocation8] sm:$0xff] %v809_v57 }
 0x335   :  { %v1087_v58 = vpop.eup %1086 }
 0x336   :  { %v810_v59 = vmul.f32 %v1087_v58, %v1083_v53 }
 0x338   :  { %812 = vst [vmem:[#allocation8 + $0x8] sm:$0xff] %v810_v59 }
 0x339   :  { %1159 = shalt.err (!%p1156_p5)
}
 0x33a   :  { %s1184_s14 = smov 128   ;;  %s1185_s15 = smov 8  }
 0x33b   :  { %824 = dma.vmem_to_hbm [thread:$0]  %s819_s12, 256, %s1252_s5, [#allocation4], %s1184_s14, %s1184_s14, %s1185_s15  }
 0x33c   :  { %1172 = dma.done.wait [#allocation4], 256  }
 0x33d   :  { %1173 = vsyncadd [#allocation4], 4294967040 }
 0x33e   :  { %828 = vsyncpa [#allocation3], 1 }
 0x33f   :  { %829 = vsyncpa [#allocation6], 1 }
 0x340   :  { %830 = vsyncpa [#allocation4], 1 }

</bundles_post_ra>
